<compile_context>
chip_gen: v6e
topology: v6e:2x2x1
jax: 0.10.0
libtpu: 0.0.40
codegen_flags: <defaults>
</compile_context>

<pallas_src>
import functools

import jax
import jax.numpy as jnp
from jax.experimental import pallas as pl
from jax.experimental.pallas import tpu as pltpu


def _round_up(n, m):
    return ((n + m - 1) // m) * m


def _dqn_kernel(x_ref, w1_ref, b1_ref, w2_ref, b2_ref, w3_ref, b3_ref, o_ref):
    # One batch tile: three MXU matmuls (bf16 in, f32 accumulate) fused with
    # bias adds + ReLUs on the VPU.  Weights/biases are VMEM-resident (constant
    # index maps).  x is cast to the compute dtype here, not in the wrapper.
    cd = w1_ref.dtype
    x = x_ref[...].astype(cd)

    h1 = jnp.dot(x, w1_ref[...], preferred_element_type=jnp.float32) + b1_ref[...]
    h1 = jnp.maximum(h1, 0.0).astype(cd)

    h2 = jnp.dot(h1, w2_ref[...], preferred_element_type=jnp.float32) + b2_ref[...]
    h2 = jnp.maximum(h2, 0.0).astype(cd)

    out = jnp.dot(h2, w3_ref[...], preferred_element_type=jnp.float32) + b3_ref[...]
    o_ref[...] = out.astype(o_ref.dtype)


def prepare_params(w1, b1, w2, b2, w3, b3, *, compute_dtype=jnp.bfloat16):
    """One-time setup: zero-pad the hidden dim to a multiple of 128 lanes and
    cast weights to the MXU compute dtype.  Padding preserves the forward
    exactly (padded hidden units have zero weight and zero bias)."""
    n_hidden = w1.shape[1]
    hidden_pad = ((n_hidden + 127) // 128) * 128
    pad = hidden_pad - n_hidden

    w1p = jnp.pad(w1, ((0, 0), (0, pad))).astype(compute_dtype)
    b1p = jnp.pad(b1, ((0, 0), (0, pad))).astype(jnp.float32)
    w2p = jnp.pad(w2, ((0, pad), (0, pad))).astype(compute_dtype)
    b2p = jnp.pad(b2, ((0, 0), (0, pad))).astype(jnp.float32)
    w3p = jnp.pad(w3, ((0, pad), (0, 0))).astype(compute_dtype)
    b3p = b3.astype(jnp.float32)
    return w1p, b1p, w2p, b2p, w3p, b3p


@functools.partial(jax.jit, static_argnames=("block_m",))
def dqn_forward(x, w1, b1, w2, b2, w3, b3, *, block_m=2048):
    batch, state_dim = x.shape
    action_length = w3.shape[1]

    # Guard against raw (unprepared) weights silently taking the slow path.
    assert w1.shape[1] % 128 == 0 and w2.shape[0] % 128 == 0, (
        "weights must be preprocessed with prepare_params (hidden padded to a "
        "multiple of 128 lanes)")

    # Batch tile: full batch if small, else block_m (multiple of 8).  For
    # batch >= 16 force at least two grid steps so v7x's second TensorCore is
    # used ("parallel" batch axis); no-op cost on single-TC v5e/v6e.
    tm = min(block_m, batch)
    if batch >= 16:
        tm = min(tm, _round_up(pl.cdiv(batch, 2), 8))
    grid = (pl.cdiv(batch, tm),)

    def const_spec(shape):
        # Constant index map: fetched once, stays VMEM-resident across steps.
        return pl.BlockSpec(shape, lambda i: (0, 0))

    return pl.pallas_call(
        _dqn_kernel,
        grid=grid,
        out_shape=jax.ShapeDtypeStruct((batch, action_length), jnp.float32),
        in_specs=[
            pl.BlockSpec((tm, state_dim), lambda i: (i, 0)),
            const_spec(w1.shape), const_spec(b1.shape),
            const_spec(w2.shape), const_spec(b2.shape),
            const_spec(w3.shape), const_spec(b3.shape),
        ],
        out_specs=pl.BlockSpec((tm, action_length), lambda i: (i, 0)),
        compiler_params=pltpu.CompilerParams(
            dimension_semantics=("parallel",),
        ),
    )(x, w1, b1, w2, b2, w3, b3)


def init_linear_params(key, in_features, out_features, dtype=jnp.float32):
    """PyTorch nn.Linear default init: U(-1/sqrt(fan_in), 1/sqrt(fan_in)).

    Returns W as [in_features, out_features] (already transposed for x @ W).
    """
    kw, kb = jax.random.split(key)
    bound = 1.0 / (in_features ** 0.5)
    w = jax.random.uniform(kw, (in_features, out_features), dtype, -bound, bound)
    b = jax.random.uniform(kb, (1, out_features), dtype, -bound, bound)
    return w, b


def reference_forward_f32(x, w1, b1, w2, b2, w3, b3):
    h1 = jnp.maximum(x @ w1 + b1, 0.0)
    h2 = jnp.maximum(h1 @ w2 + b2, 0.0)
    return h2 @ w3 + b3


def reference_forward_mirrored(x, w1, b1, w2, b2, w3, b3):
    """Mirrors the kernel's numerics exactly: bf16 operands, f32 accumulation."""
    cd = w1.dtype
    h1 = jnp.dot(x.astype(cd), w1, preferred_element_type=jnp.float32) + b1
    h1 = jnp.maximum(h1, 0.0).astype(cd)
    h2 = jnp.dot(h1, w2, preferred_element_type=jnp.float32) + b2
    h2 = jnp.maximum(h2, 0.0).astype(cd)
    return jnp.dot(h2.astype(cd), w3, preferred_element_type=jnp.float32) + b3


if __name__ == "__main__":
    # Small shapes consistent with the module: state_length=8, n_hidden=32,
    # action_length=4, batch=2.
    batch = 2
    state_length = 8
    n_hidden = 32
    action_length = 4

    key = jax.random.PRNGKey(0)
    k_x, k1, k2, k3, k_mid, k_big = jax.random.split(key, 6)

    x = jax.random.normal(k_x, (batch, state_length), jnp.float32)
    w1, b1 = init_linear_params(k1, state_length, n_hidden)
    w2, b2 = init_linear_params(k2, n_hidden, n_hidden)
    w3, b3 = init_linear_params(k3, n_hidden, action_length)

    params = prepare_params(w1, b1, w2, b2, w3, b3)

    # --- small batch (matches the module's get_Q / act usage; grid=(1,)) ---
    q = jax.block_until_ready(dqn_forward(x, *params))
    assert q.shape == (batch, action_length)

    ref_mirror = reference_forward_mirrored(x, *params)
    assert jnp.allclose(q, ref_mirror, atol=1e-3, rtol=1e-3), \
        "mismatch vs mirrored bf16/f32-accum reference"

    ref_f32 = reference_forward_f32(x, w1, b1, w2, b2, w3, b3)
    assert jnp.allclose(q, ref_f32, atol=5e-2, rtol=5e-2), \
        "mismatch vs f32 reference (beyond bf16 tolerance)"

    # --- non-multiple batch with a small block_m: exercises the multi-step
    #     grid and a partial last tile (masked writeback, no NaN leakage) ---
    xm = jax.random.normal(k_mid, (100, state_length), jnp.float32)
    qm = jax.block_until_ready(dqn_forward(xm, *params, block_m=16))
    refm = reference_forward_mirrored(xm, *params)
    assert qm.shape == (100, action_length)
    assert bool(jnp.all(jnp.isfinite(qm))), "non-finite values on partial tile"
    assert jnp.allclose(qm, refm, atol=1e-3, rtol=1e-3), \
        "mismatch on partial-tile gridded batch"

    # --- larger batch: default block_m, >=2 grid steps ("parallel" axis) ---
    xb = jax.random.normal(k_big, (512, state_length), jnp.float32)
    qb = jax.block_until_ready(dqn_forward(xb, *params))
    refb = reference_forward_mirrored(xb, *params)
    assert qb.shape == (512, action_length)
    assert jnp.allclose(qb, refb, atol=1e-3, rtol=1e-3), \
        "mismatch on large gridded batch"

    print("KERNEL_OK")
</pallas_src>

<mosaic_0001>
module attributes {stable_mosaic.version = 11 : i64} {
  func.func @_dqn_kernel(%arg0: i32, %arg1: memref<2x8xf32, #tpu.memory_space<vmem>>, %arg2: memref<8x128xbf16, #tpu.memory_space<vmem>>, %arg3: memref<1x128xf32, #tpu.memory_space<vmem>>, %arg4: memref<128x128xbf16, #tpu.memory_space<vmem>>, %arg5: memref<1x128xf32, #tpu.memory_space<vmem>>, %arg6: memref<128x4xbf16, #tpu.memory_space<vmem>>, %arg7: memref<1x4xf32, #tpu.memory_space<vmem>>, %arg8: memref<2x4xf32, #tpu.memory_space<vmem>>) attributes {dimension_semantics = [#tpu.dimension_semantics<parallel>], iteration_bounds = array<i64: 1>, scalar_prefetch = 0 : i64, scratch_operands = 0 : i64, tpu.core_type = #tpu.core_type<tc>, window_params = [{transform_indices = @transform_0, window_bounds = array<i64: 2, 8>}, {pipeline_mode = #tpu.pipeline_mode<synchronous>, transform_indices = @transform_1, window_bounds = array<i64: 8, 128>}, {pipeline_mode = #tpu.pipeline_mode<synchronous>, transform_indices = @transform_2, window_bounds = array<i64: 1, 128>}, {pipeline_mode = #tpu.pipeline_mode<synchronous>, transform_indices = @transform_3, window_bounds = array<i64: 128, 128>}, {pipeline_mode = #tpu.pipeline_mode<synchronous>, transform_indices = @transform_4, window_bounds = array<i64: 1, 128>}, {pipeline_mode = #tpu.pipeline_mode<synchronous>, transform_indices = @transform_5, window_bounds = array<i64: 128, 4>}, {pipeline_mode = #tpu.pipeline_mode<synchronous>, transform_indices = @transform_6, window_bounds = array<i64: 1, 4>}, {transform_indices = @transform_7, window_bounds = array<i64: 2, 4>}]} {
    %c0 = arith.constant 0 : index
    %c0_0 = arith.constant 0 : index
    %0 = vector.load %arg1[%c0, %c0_0] : memref<2x8xf32, #tpu.memory_space<vmem>>, vector<2x8xf32>
    %1 = arith.truncf %0 : vector<2x8xf32> to vector<2x8xbf16>
    %c0_1 = arith.constant 0 : index
    %c0_2 = arith.constant 0 : index
    %2 = vector.load %arg2[%c0_1, %c0_2] : memref<8x128xbf16, #tpu.memory_space<vmem>>, vector<8x128xbf16>
    %cst = arith.constant dense<0.000000e+00> : vector<2x128xf32>
    %3 = tpu.matmul %1, %2, %cst {dimension_numbers = #tpu.dot_dimension_numbers<[1], [0], [0], [1], [0, 0, 1, 1], [], []>} : vector<2x8xbf16>, vector<8x128xbf16>, vector<2x128xf32> -> vector<2x128xf32>
    %c0_3 = arith.constant 0 : index
    %c0_4 = arith.constant 0 : index
    %4 = vector.load %arg3[%c0_3, %c0_4] : memref<1x128xf32, #tpu.memory_space<vmem>>, vector<1x128xf32>
    %5 = vector.broadcast %4 : vector<1x128xf32> to vector<2x128xf32>
    %6 = arith.addf %3, %5 : vector<2x128xf32>
    %cst_5 = arith.constant 0.000000e+00 : f32
    %7 = vector.broadcast %cst_5 : f32 to vector<2x128xf32>
    %8 = arith.maximumf %6, %7 : vector<2x128xf32>
    %9 = arith.truncf %8 : vector<2x128xf32> to vector<2x128xbf16>
    %c0_6 = arith.constant 0 : index
    %c0_7 = arith.constant 0 : index
    %10 = vector.load %arg4[%c0_6, %c0_7] : memref<128x128xbf16, #tpu.memory_space<vmem>>, vector<128x128xbf16>
    %cst_8 = arith.constant dense<0.000000e+00> : vector<2x128xf32>
    %11 = tpu.matmul %9, %10, %cst_8 {dimension_numbers = #tpu.dot_dimension_numbers<[1], [0], [0], [1], [0, 0, 1, 1], [], []>} : vector<2x128xbf16>, vector<128x128xbf16>, vector<2x128xf32> -> vector<2x128xf32>
    %c0_9 = arith.constant 0 : index
    %c0_10 = arith.constant 0 : index
    %12 = vector.load %arg5[%c0_9, %c0_10] : memref<1x128xf32, #tpu.memory_space<vmem>>, vector<1x128xf32>
    %13 = vector.broadcast %12 : vector<1x128xf32> to vector<2x128xf32>
    %14 = arith.addf %11, %13 : vector<2x128xf32>
    %cst_11 = arith.constant 0.000000e+00 : f32
    %15 = vector.broadcast %cst_11 : f32 to vector<2x128xf32>
    %16 = arith.maximumf %14, %15 : vector<2x128xf32>
    %17 = arith.truncf %16 : vector<2x128xf32> to vector<2x128xbf16>
    %c0_12 = arith.constant 0 : index
    %c0_13 = arith.constant 0 : index
    %18 = vector.load %arg6[%c0_12, %c0_13] : memref<128x4xbf16, #tpu.memory_space<vmem>>, vector<128x4xbf16>
    %cst_14 = arith.constant dense<0.000000e+00> : vector<2x4xf32>
    %19 = tpu.matmul %17, %18, %cst_14 {dimension_numbers = #tpu.dot_dimension_numbers<[1], [0], [0], [1], [0, 0, 1, 1], [], []>} : vector<2x128xbf16>, vector<128x4xbf16>, vector<2x4xf32> -> vector<2x4xf32>
    %c0_15 = arith.constant 0 : index
    %c0_16 = arith.constant 0 : index
    %20 = vector.load %arg7[%c0_15, %c0_16] : memref<1x4xf32, #tpu.memory_space<vmem>>, vector<1x4xf32>
    %21 = vector.broadcast %20 : vector<1x4xf32> to vector<2x4xf32>
    %22 = arith.addf %19, %21 : vector<2x4xf32>
    %c0_17 = arith.constant 0 : index
    %c0_18 = arith.constant 0 : index
    %23 = vector.load %arg8[%c0_17, %c0_18] : memref<2x4xf32, #tpu.memory_space<vmem>>, vector<2x4xf32>
    tpu.vector_store %arg8[%c0_17, %c0_18], %22 {strides = array<i32>} : memref<2x4xf32, #tpu.memory_space<vmem>>, vector<2x4xf32>,
    return
  }
  func.func @transform_0(%arg0: i32) -> (i32, i32) {
    %c0_i32 = arith.constant 0 : i32
    %c0_i32_0 = arith.constant 0 : i32
    return %arg0, %c0_i32 : i32, i32
  }
  func.func @transform_1(%arg0: i32) -> (i32, i32) {
    %c0_i32 = arith.constant 0 : i32
    %c0_i32_0 = arith.constant 0 : i32
    %c0_i32_1 = arith.constant 0 : i32
    return %c0_i32, %c0_i32_0 : i32, i32
  }
  func.func @transform_2(%arg0: i32) -> (i32, i32) {
    %c0_i32 = arith.constant 0 : i32
    %c0_i32_0 = arith.constant 0 : i32
    %c0_i32_1 = arith.constant 0 : i32
    return %c0_i32, %c0_i32_0 : i32, i32
  }
  func.func @transform_3(%arg0: i32) -> (i32, i32) {
    %c0_i32 = arith.constant 0 : i32
    %c0_i32_0 = arith.constant 0 : i32
    %c0_i32_1 = arith.constant 0 : i32
    return %c0_i32, %c0_i32_0 : i32, i32
  }
  func.func @transform_4(%arg0: i32) -> (i32, i32) {
    %c0_i32 = arith.constant 0 : i32
    %c0_i32_0 = arith.constant 0 : i32
    %c0_i32_1 = arith.constant 0 : i32
    return %c0_i32, %c0_i32_0 : i32, i32
  }
  func.func @transform_5(%arg0: i32) -> (i32, i32) {
    %c0_i32 = arith.constant 0 : i32
    %c0_i32_0 = arith.constant 0 : i32
    %c0_i32_1 = arith.constant 0 : i32
    return %c0_i32, %c0_i32_0 : i32, i32
  }
  func.func @transform_6(%arg0: i32) -> (i32, i32) {
    %c0_i32 = arith.constant 0 : i32
    %c0_i32_0 = arith.constant 0 : i32
    %c0_i32_1 = arith.constant 0 : i32
    return %c0_i32, %c0_i32_0 : i32, i32
  }
  func.func @transform_7(%arg0: i32) -> (i32, i32) {
    %c0_i32 = arith.constant 0 : i32
    %c0_i32_0 = arith.constant 0 : i32
    return %arg0, %c0_i32 : i32, i32
  }
}

</mosaic_0001>

<bundles_post_ra>
// kernel: dqn_forward.1
= control target key start
LH: loop header
LB: loop body
LE: loop exit
PB: predicated region body
PF: predicated region fallthrough
CT: control target
= control target key end

     0   :  { %12 = vsyncpa [#allocation3], 0  ;;  %s624_s0 = inlined_call_operand.vmem [shape: f32[2,8], index: 0, kind: input, shape index: {}]   ;;  %s625_s1 = inlined_call_operand.vmem [shape: bf16[8,128], index: 1, kind: input, shape index: {}]   ;;  %s626_s2 = inlined_call_operand.vmem [shape: f32[1,128], index: 2, kind: input, shape index: {}]   ;;  %s627_s3 = inlined_call_operand.vmem [shape: bf16[128,128], index: 3, kind: input, shape index: {}]   ;;  %s628_s4 = inlined_call_operand.hbm [shape: f32[1,128], index: 4, kind: input, shape index: {}]   ;;  %s629_s5 = inlined_call_operand.vmem [shape: bf16[128,4], index: 5, kind: input, shape index: {}]   ;;  %s630_s6 = inlined_call_operand.vmem [shape: f32[1,4], index: 6, kind: input, shape index: {}]   ;;  %s631_s7 = inlined_call_operand.hbm [shape: f32[2,4], index: 7, kind: output, shape index: {}]  }
   0x1   :  { %13 = vsyncpa [#allocation4], 0  ;;  %s491_s24 = smov [#allocation2]  }
   0x2   :  { %s28_s25 = sshll.u32 %s491_s24, 4  ;;  %s29_s25 = int_to_ptr.vmem [resolvable:$true] %s28_s25 }
   0x3   :  { %s455_s26 = scalar_lea.vmem %s29_s25, 16  ;;  %s459_s27 = scalar_lea.vmem %s29_s25, 32 }
   0x4   :  { %p456_p0 = scmp.ne.s32.totalorder %s29_s25, %s455_s26  ;;  %p460_p1 = scmp.lt.s32.totalorder %s29_s25, %s29_s25 }
   0x5   :  { %p461_p2 = scmp.lt.s32.totalorder %s459_s27, %s455_s26 }
   0x7   :  { %p462_p3 = por %p461_p2, %p460_p1 }
   0x9   :  { %p463_p4 = pnand %p462_p3, %p456_p0 }
   0xb   :  { %466 = shalt.err (!%p463_p4)
}
   0xc   :  { %31 = dma.hbm_to_vmem [thread:$0]  %s628_s4, 16, %s29_s25, [#allocation3]  }
   0xd   :  { %487 = dma.done.wait [#allocation3], 16  }
   0xe   :  { %488 = vsyncadd [#allocation3], 4294967280  ;;  %v492_v0 = vmov 0.0   ;;  %vm493_vm0 = vmmov 0   ;;  %vm54_vm1 = vcmask 1043456   ;;  %v431_v5 = vld [vmem:[%s627_s3 + $0x38] sm:$0xff]  }
   0xf   :  { %381 = vmatprep.subr.bf16.mxu0 %v492_v0  ;;  %383 = vmatprep.mubr.msk.bf16.mxu0 %vm493_vm0, %v492_v0  ;;  %v42_v1 = vld [vmem:[%s625_s1] sm:$0xf]  ;;  %vm50_vm2 = vcmask 64512   ;;  %v432_v6 = vld [vmem:[%s627_s3 + $0x30] sm:$0xff]   ;;  %v433_v7 = vld [vmem:[%s627_s3 + $0x28] sm:$0xff]   ;;  %s494_s16 = smov [#allocation5]  }
  0x10   :  { %387 = vmatprep.subr.bf16.mxu1 %v492_v0  ;;  %403 = vmatprep.mubr.msk.bf16.mxu1 %vm493_vm0, %v492_v0  ;;  %v40_v2 = vld [vmem:[%s624_s0] sm:$0x3]  ;;  %v56_v3 = vsel %vm54_vm1, %v42_v1, 0  ;;  %v435_v9 = vld [vmem:[%s627_s3 + $0x18] sm:$0xff]   ;;  %v436_v10 = vld [vmem:[%s627_s3 + $0x10] sm:$0xff]   ;;  %s332_s17 = sshll.u32 %s494_s16, 4  ;;  %s333_s17 = int_to_ptr.vmem [resolvable:$true] %s332_s17 }
  0x11   :  { %v41_v4 = vpack.c.bf16 %v40_v2, %v40_v2  ;;  %382 = vmatpush3.bf16.msra.mxu0 %v56_v3  ;;  %388 = vmatpush3.bf16.msra.mxu1 %v431_v5  ;;  %v434_v8 = vld [vmem:[%s627_s3 + $0x20] sm:$0xff]   ;;  %v437_v11 = vld [vmem:[%s627_s3 + $0x8] sm:$0xff]   ;;  %v439_v13 = vld [vmem:[%s629_s5 + $0x38] sm:$0xff]   ;;  %vm324_vm3 = vcmask 25600   ;;  %p472_p6 = scmp.lt.s32.totalorder %s333_s17, %s333_s17 }
  0x12   :  { %407 = vmatprep.subr.bf16.mxu0 %v492_v0  ;;  %389 = vmatprep.subr.bf16.mxu1 %v492_v0  ;;  %v438_v12 = vld [vmem:[%s627_s3] sm:$0xff]   ;;  %v440_v14 = vld [vmem:[%s629_s5 + $0x30] sm:$0xff]   ;;  %v441_v15 = vld [vmem:[%s629_s5 + $0x28] sm:$0xff]  }
  0x13   :  { %v442_v16 = vld [vmem:[%s629_s5 + $0x20] sm:$0xff]   ;;  %v443_v17 = vld [vmem:[%s629_s5 + $0x18] sm:$0xff]   ;;  %v444_v18 = vld [vmem:[%s629_s5 + $0x10] sm:$0xff]  }
  0x14   :  { %384 = vmatmul.mubr.msk.bf16.vlgmr.msra.gmra.mxu0 %vm50_vm2, %v41_v4  ;;  %v341_v19 = vld [vmem:[%s626_s2] ss:$0 sm:$0xff]  ;;  %v445_v27 = vld [vmem:[%s629_s5 + $0x8] sm:$0xff]  }
  0x15   :  { %423 = vmatprep.mubr.msk.bf16.mxu0 %vm493_vm0, %v492_v0  ;;  %390 = vmatpush3.bf16.msra.mxu1 %v432_v6  ;;  %v446_v28 = vld [vmem:[%s629_s5] sm:$0xff]   ;;  %s467_s5 = scalar_lea.vmem %s333_s17, 32 }
  0x16   :  { %391 = vmatprep.subr.bf16.mxu1 %v492_v0  ;;  %408 = vmatpush3.bf16.msra.mxu0 %v439_v13  ;;  %v343_v29 = vld [vmem:[#allocation2] ss:$0 sm:$0xff]  ;;  %p468_p5 = scmp.ne.s32.totalorder %s333_s17, %s467_s5  ;;  %p473_p7 = scmp.lt.s32.totalorder %s467_s5, %s467_s5 }
  0x17   :  { %409 = vmatprep.subr.bf16.mxu0 %v492_v0  ;;  %v352_v37 = vld [vmem:[%s630_s6] ss:$0 sm:$0xff] }
  0x18   :  { %p474_p8 = por %p473_p7, %p472_p6 }
  0x19   :  { %392 = vmatpush3.bf16.msra.mxu1 %v433_v7 }
  0x1a   :  { %393 = vmatprep.subr.bf16.mxu1 %v492_v0  ;;  %410 = vmatpush3.bf16.msra.mxu0 %v440_v14  ;;  %p475_p9 = pnand %p474_p8, %p468_p5 }
  0x1b   :  { %411 = vmatprep.subr.bf16.mxu0 %v492_v0 }
  0x1d   :  { %394 = vmatpush3.bf16.msra.mxu1 %v434_v8 }
  0x1e   :  { %395 = vmatprep.subr.bf16.mxu1 %v492_v0  ;;  %412 = vmatpush3.bf16.msra.mxu0 %v441_v15 }
  0x1f   :  { %413 = vmatprep.subr.bf16.mxu0 %v492_v0 }
  0x21   :  { %396 = vmatpush3.bf16.msra.mxu1 %v435_v9 }
  0x22   :  { %397 = vmatprep.subr.bf16.mxu1 %v492_v0  ;;  %414 = vmatpush3.bf16.msra.mxu0 %v442_v16 }
  0x23   :  { %415 = vmatprep.subr.bf16.mxu0 %v492_v0 }
  0x25   :  { %398 = vmatpush3.bf16.msra.mxu1 %v436_v10 }
  0x26   :  { %399 = vmatprep.subr.bf16.mxu1 %v492_v0  ;;  %416 = vmatpush3.bf16.msra.mxu0 %v443_v17 }
  0x27   :  { %417 = vmatprep.subr.bf16.mxu0 %v492_v0 }
  0x29   :  { %400 = vmatpush3.bf16.msra.mxu1 %v437_v11 }
  0x2a   :  { %401 = vmatprep.subr.bf16.mxu1 %v492_v0  ;;  %418 = vmatpush3.bf16.msra.mxu0 %v444_v18 }
  0x2b   :  { %419 = vmatprep.subr.bf16.mxu0 %v492_v0 }
  0x2d   :  { %402 = vmatpush3.bf16.msra.mxu1 %v438_v12 }
  0x2e   :  { %420 = vmatpush3.bf16.msra.mxu0 %v445_v27 }
  0x2f   :  { %421 = vmatprep.subr.bf16.mxu0 %v492_v0 }
  0x32   :  { %422 = vmatpush3.bf16.msra.mxu0 %v446_v28 }
  0xd4   :  { %v92_v20 = vpop.f32.mrf.mxu0 }
  0xd5   :  { %v93_v21 = vadd.f32 %v341_v19, %v92_v20 }
  0xd6   :  { %v385_v22 = vpop.f32.mrf.mxu0 }
  0xd7   :  { %v98_v23 = vmax.f32 %v93_v21, 0.0 }
  0xd8   :  { %v95_v24 = vpop.f32.mrf.mxu0 }
  0xd9   :  { %v99_v25 = vpack.c.bf16 %v98_v23, %v98_v23 }
  0xda   :  { %v386_v26 = vpop.f32.mrf.mxu0 }
  0xdb   :  { %404 = vmatmul.mubr.bf16.vlgmr.msra.gmra.mxu1 %v99_v25 }
 0x19b   :  { %v205_v30 = vpop.f32.mrf.mxu1 }
 0x19c   :  { %v206_v31 = vadd.f32 %v343_v29, %v205_v30 }
 0x19d   :  { %v405_v32 = vpop.f32.mrf.mxu1 }
 0x19e   :  { %v211_v33 = vmax.f32 %v206_v31, 0.0 }
 0x19f   :  { %v208_v34 = vpop.f32.mrf.mxu1 }
 0x1a0   :  { %v212_v35 = vpack.c.bf16 %v211_v33, %v211_v33 }
 0x1a1   :  { %v406_v36 = vpop.f32.mrf.mxu1 }
 0x1a2   :  { %424 = vmatmul.mubr.bf16.vlgmr.msra.gmra.mxu0 %v212_v35 }
 0x262   :  { %v318_v38 = vpop.f32.mrf.mxu0 }
 0x263   :  { %v319_v39 = vadd.f32 %v352_v37, %v318_v38 }
 0x264   :  { %v425_v40 = vpop.f32.mrf.mxu0 }
 0x265   :  { %325 = vst.msk [vmem:[#allocation5] sm:$0x3] %vm324_vm3, %v319_v39 }
 0x266   :  { %v321_v41 = vpop.f32.mrf.mxu0 }
 0x267   :  { %478 = shalt.err (!%p475_p9)
}
 0x268   :  { %335 = dma.vmem_to_hbm [thread:$0]  %s333_s17, 32, %s631_s7, [#allocation4]   ;;  %v426_v42 = vpop.f32.mrf.mxu0 }
 0x269   :  { %489 = dma.done.wait [#allocation4], 32  }
 0x26a   :  { %490 = vsyncadd [#allocation4], 4294967264 }
 0x26b   :  { %339 = vsyncpa [#allocation3], 1 }
 0x26c   :  { %340 = vsyncpa [#allocation4], 1 }

</bundles_post_ra>
